<compile_context>
chip_gen: v7x
topology: tpu7x:2x2x1
jax: 0.10.0
libtpu: 0.0.40
codegen_flags: <defaults>
</compile_context>

<pallas_src>
import jax
import jax.numpy as jnp
from jax.experimental import pallas as pl
from jax.experimental.pallas import tpu as pltpu


def _round_up(x: int, m: int) -> int:
    return (x + m - 1) // m * m


def t2v_kernel(tau_ref, w_ref, b_ref, o_ref):
    # tau_ref: (tile_m, d_mark), w_ref: (d_mark, out_pad), b_ref: (1, out_pad)
    z = jnp.dot(tau_ref[...], w_ref[...],
                preferred_element_type=jnp.float32) + b_ref[...]     # (tile_m, out_pad)
    col = jax.lax.broadcasted_iota(jnp.int32, z.shape, 1)
    # column 0 is the linear (trend) term, columns >= 1 get sin() (periodic term)
    o_ref[...] = jnp.where(col == 0, z, jnp.sin(z)).astype(o_ref.dtype)


def time2vec(tau, w0, b0, w, b):
    """tau: (B, d_mark, L) -> (B, L, out_features) (trend + periodic embedding)."""
    B, d_mark, L = tau.shape
    out_features = w.shape[1] + 1

    # Flatten all (batch, time) rows into a single M dimension.
    M = B * L
    tau_rows = jnp.swapaxes(tau, -1, -2).reshape(M, d_mark)          # (M, d_mark)

    # Lane-dense output: pad feature dim to a multiple of 128.
    out_pad = _round_up(out_features, 128)

    # Row tiling: single block at small M, 512-row tiles when M grows.
    tile_m = min(_round_up(M, 8), 512)
    M_pad = _round_up(M, tile_m)
    if M_pad != M:
        tau_rows = jnp.pad(tau_rows, ((0, M_pad - M), (0, 0)))

    # Fuse trend (col 0) and periodic (cols 1..) weights/biases, pad to out_pad.
    w_full = jnp.concatenate([w0, w], axis=1)                        # (d_mark, out_features)
    w_full = jnp.pad(w_full, ((0, 0), (0, out_pad - out_features)))
    b_full = jnp.concatenate([b0, b])[None, :]                       # (1, out_features)
    b_full = jnp.pad(b_full, ((0, 0), (0, out_pad - out_features)))

    grid = (M_pad // tile_m,)

    out = pl.pallas_call(
        t2v_kernel,
        out_shape=jax.ShapeDtypeStruct((M_pad, out_pad), tau.dtype),
        grid=grid,
        in_specs=[
            pl.BlockSpec((tile_m, d_mark), lambda i: (i, 0)),
            pl.BlockSpec((d_mark, out_pad), lambda i: (0, 0)),
            pl.BlockSpec((1, out_pad), lambda i: (0, 0)),
        ],
        out_specs=pl.BlockSpec((tile_m, out_pad), lambda i: (i, 0)),
        compiler_params=pltpu.CompilerParams(
            dimension_semantics=("parallel",)),
        cost_estimate=pl.CostEstimate(
            flops=2 * M * d_mark * out_features,
            transcendentals=M * (out_features - 1),
            bytes_accessed=4 * (M * d_mark
                                + d_mark * out_features
                                + out_features
                                + M * out_features),
        ),
    )(tau_rows, w_full, b_full)

    # Drop row / feature padding, restore (B, L, out_features).
    return out[:M, :out_features].reshape(B, L, out_features)


def sine_activation(tau, w0, b0, w, b, d_features):
    """Full module semantics: (B, d_mark, L) -> (B, d_features, L, out_features).

    The d_features repeat is value-free; prefer consuming `time2vec(...)`
    directly and fusing the broadcast into the next op when possible.
    """
    out = time2vec(tau, w0, b0, w, b)                                # (B, L, out_features)
    B, L, out_features = out.shape
    # unsqueeze(1).repeat(1, d_features, 1, 1)  (glue / broadcast)
    return jnp.broadcast_to(out[:, None, :, :], (B, d_features, L, out_features))


if __name__ == "__main__":
    # Small shapes consistent with the module.
    B = 2            # batch
    d_mark = 4       # time-mark feature dim (matmul contracting dim)
    L = 8            # sequence length
    out_features = 32
    d_features = 6   # repeat factor
    in_features = d_mark  # unused by forward, kept for signature parity

    key = jax.random.PRNGKey(0)
    k_tau, k_w0, k_b0, k_w, k_b = jax.random.split(key, 5)

    tau = jax.random.normal(k_tau, (B, d_mark, L), dtype=jnp.float32)
    data = jax.random.normal(key, (B, L, in_features), dtype=jnp.float32)  # unused, as in PyTorch

    # nn.init.uniform_(-1, 1) for all parameters, deterministic here.
    w0 = jax.random.uniform(k_w0, (d_mark, 1), minval=-1.0, maxval=1.0, dtype=jnp.float32)
    b0 = jax.random.uniform(k_b0, (1,), minval=-1.0, maxval=1.0, dtype=jnp.float32)
    w = jax.random.uniform(k_w, (d_mark, out_features - 1), minval=-1.0, maxval=1.0, dtype=jnp.float32)
    b = jax.random.uniform(k_b, (out_features - 1,), minval=-1.0, maxval=1.0, dtype=jnp.float32)

    out = sine_activation(tau, w0, b0, w, b, d_features)
    out = jax.block_until_ready(out)

    # Pure-JAX reference for correctness.
    tau_t = jnp.swapaxes(tau, -1, -2)
    v2 = tau_t @ w0 + b0
    v1 = jnp.sin(tau_t @ w + b)
    ref = jnp.concatenate([v2, v1], axis=-1)
    ref = jnp.broadcast_to(ref[:, None, :, :], (B, d_features, L, out_features))

    assert out.shape == (B, d_features, L, out_features)
    assert jnp.allclose(out, ref, atol=1e-4, rtol=1e-4)

    print("KERNEL_OK")
</pallas_src>

<mosaic_0001>
module attributes {stable_mosaic.version = 11 : i64} {
  func.func @t2v_kernel(%arg0: i32, %arg1: memref<16x4xf32, #tpu.memory_space<vmem>>, %arg2: memref<4x128xf32, #tpu.memory_space<vmem>>, %arg3: memref<1x128xf32, #tpu.memory_space<vmem>>, %arg4: memref<16x128xf32, #tpu.memory_space<vmem>>) attributes {dimension_semantics = [#tpu.dimension_semantics<parallel>], iteration_bounds = array<i64: 1>, scalar_prefetch = 0 : i64, scratch_operands = 0 : i64, tpu.core_type = #tpu.core_type<tc>, window_params = [{transform_indices = @transform_0, window_bounds = array<i64: 16, 4>}, {pipeline_mode = #tpu.pipeline_mode<synchronous>, transform_indices = @transform_1, window_bounds = array<i64: 4, 128>}, {pipeline_mode = #tpu.pipeline_mode<synchronous>, transform_indices = @transform_2, window_bounds = array<i64: 1, 128>}, {transform_indices = @transform_3, window_bounds = array<i64: 16, 128>}]} {
    %c0 = arith.constant 0 : index
    %c0_0 = arith.constant 0 : index
    %0 = vector.load %arg1[%c0, %c0_0] : memref<16x4xf32, #tpu.memory_space<vmem>>, vector<16x4xf32>
    %c0_1 = arith.constant 0 : index
    %c0_2 = arith.constant 0 : index
    %1 = vector.load %arg2[%c0_1, %c0_2] : memref<4x128xf32, #tpu.memory_space<vmem>>, vector<4x128xf32>
    %cst = arith.constant dense<0.000000e+00> : vector<16x128xf32>
    %2 = tpu.matmul %0, %1, %cst {dimension_numbers = #tpu.dot_dimension_numbers<[1], [0], [0], [1], [0, 0, 1, 1], [], []>} : vector<16x4xf32>, vector<4x128xf32>, vector<16x128xf32> -> vector<16x128xf32>
    %c0_3 = arith.constant 0 : index
    %c0_4 = arith.constant 0 : index
    %3 = vector.load %arg3[%c0_3, %c0_4] : memref<1x128xf32, #tpu.memory_space<vmem>>, vector<1x128xf32>
    %4 = vector.broadcast %3 : vector<1x128xf32> to vector<16x128xf32>
    %5 = arith.addf %2, %4 : vector<16x128xf32>
    %6 = tpu.iota {dimensions = array<i32: 1>} : vector<16x128xi32>
    %c0_i32 = arith.constant 0 : i32
    %7 = vector.broadcast %c0_i32 : i32 to vector<16x128xi32>
    %8 = arith.cmpi eq, %6, %7 : vector<16x128xi32>
    %9 = math.sin %5 : vector<16x128xf32>
    %10 = arith.select %8, %5, %9 : vector<16x128xi1>, vector<16x128xf32>
    %c0_5 = arith.constant 0 : index
    %c0_6 = arith.constant 0 : index
    %11 = vector.load %arg4[%c0_5, %c0_6] : memref<16x128xf32, #tpu.memory_space<vmem>>, vector<16x128xf32>
    tpu.vector_store %arg4[%c0_5, %c0_6], %10 {strides = array<i32>} : memref<16x128xf32, #tpu.memory_space<vmem>>, vector<16x128xf32>,
    return
  }
  func.func @transform_0(%arg0: i32) -> (i32, i32) {
    %c0_i32 = arith.constant 0 : i32
    %c0_i32_0 = arith.constant 0 : i32
    return %arg0, %c0_i32 : i32, i32
  }
  func.func @transform_1(%arg0: i32) -> (i32, i32) {
    %c0_i32 = arith.constant 0 : i32
    %c0_i32_0 = arith.constant 0 : i32
    %c0_i32_1 = arith.constant 0 : i32
    return %c0_i32, %c0_i32_0 : i32, i32
  }
  func.func @transform_2(%arg0: i32) -> (i32, i32) {
    %c0_i32 = arith.constant 0 : i32
    %c0_i32_0 = arith.constant 0 : i32
    %c0_i32_1 = arith.constant 0 : i32
    return %c0_i32, %c0_i32_0 : i32, i32
  }
  func.func @transform_3(%arg0: i32) -> (i32, i32) {
    %c0_i32 = arith.constant 0 : i32
    %c0_i32_0 = arith.constant 0 : i32
    return %arg0, %c0_i32 : i32, i32
  }
}

</mosaic_0001>

<bundles_post_ra>
// kernel: tpu_custom_call.1
= control target key start
LH: loop header
LB: loop body
LE: loop exit
PB: predicated region body
PF: predicated region fallthrough
CT: control target
= control target key end

     0   :  { %vm32_vm0 = vcmask 1043456   ;;  %vm25_vm1 = vcmask 31744   ;;  %s530_s0 = inlined_call_operand.vmem [shape: f32[16,4], index: 0, kind: input, shape index: {}]   ;;  %s531_s1 = inlined_call_operand.vmem [shape: f32[4,128], index: 1, kind: input, shape index: {}]   ;;  %s532_s2 = inlined_call_operand.vmem [shape: f32[1,128], index: 2, kind: input, shape index: {}]   ;;  %s533_s3 = inlined_call_operand.hbm [shape: f32[16,128], index: 3, kind: output, shape index: {}]  }
   0x1   :  { %v17_v0 = vld [vmem:[%s531_s1] sm:$0xf]  ;;  %v16_v2 = vld [vmem:[%s530_s0 + $0x8] sm:$0xff] }
   0x2   :  { %v15_v1 = vld [vmem:[%s530_s0] sm:$0xff]  ;;  %357 = vmatprep.subr.msk.mxu0 %vm32_vm0, %v17_v0 }
   0x3   :  { %359 = vmatprep.mubr.msk.f32.mxu0 %vm25_vm1, %v15_v1 }
   0x4   :  { %8 = vsyncpa [#allocation3], 0  ;;  %358 = vmatpush3.msk.msra.mxu0 %vm32_vm0, %v17_v0  ;;  %v342_v3 = vld [vmem:[%s532_s2] ss:$0 sm:$0xff]  ;;  %v411_v28 = vmov 683565275  }
   0x5   :  { %360 = vmatmul.mubr.msk.f32.vlgmr.msra.gmra.mrb[0].mxu0 %vm25_vm1, %v16_v2  ;;  %v412_v32 = vmov 2475754826   ;;  %v413_v34 = vmov 2131351028   ;;  %v414_v36 = vmov 2102212464  }
   0x6   :  { %v415_v38 = vmov 920167782   ;;  %v416_v45 = vmov 1326507024   ;;  %s417_s0 = smov [#allocation2]  }
   0x7   :  { %s331_s1 = sshll.u32 %s417_s0, 4  ;;  %s332_s1 = int_to_ptr.vmem [resolvable:$true] %s331_s1 }
   0x8   :  { %s387_s2 = scalar_lea.vmem %s332_s1, 256  ;;  %p392_p1 = scmp.lt.s32.totalorder %s332_s1, %s332_s1 }
   0x9   :  { %p388_p0 = scmp.ne.s32.totalorder %s332_s1, %s387_s2  ;;  %p393_p2 = scmp.lt.s32.totalorder %s387_s2, %s387_s2 }
   0xb   :  { %p394_p3 = por %p393_p2, %p392_p1 }
   0xd   :  { %p395_p4 = pnand %p394_p3, %p388_p0 }
  0xd8   :  { %v361_v4 = vpop.f32.mrb[0].mxu0 }
  0xd9   :  { %v452_v5 = vadd.f32 %v361_v4, %v342_v3  ;;  %v102_v6 = vpop.f32.mrb[1].mxu0 }
  0xda   :  { %v454_v7 = vadd.f32 %v342_v3, %v102_v6 }
  0xdb   :  { %v218_v8 = vand.u32 2147483647, %v452_v5  ;;  %v221_v9 = vand.u32 2139095040, %v452_v5  ;;  %vm220_vm0 = vcmp.lt.s32.totalorder %v452_v5, 0 }
  0xdc   :  { %v117_v10 = vand.u32 2139095040, %v454_v7  ;;  %v114_v13 = vand.u32 2147483647, %v454_v7 }
  0xdd   :  { %v222_v11 = vshrl.u32 %v221_v9, 23  ;;  %v225_v12 = vand.u32 8388607, %v218_v8  ;;  %vm219_vm1 = vcmp.le.f32.partialorder %v218_v8, 0.7853982 }
  0xde   :  { %v118_v14 = vshrl.u32 %v117_v10, 23  ;;  %v464_v19 = vand.u32 8388607, %v114_v13 }
  0xdf   :  { %v350_v15 = vadd.s32 4294967169, %v222_v11  ;;  %v226_v18 = vor.u32 8388608, %v225_v12 }
  0xe0   :  { %v346_v16 = vadd.s32 4294967169, %v118_v14  ;;  %v122_v26 = vor.u32 8388608, %v464_v19 }
  0xe1   :  { %v228_v17 = vadd.s32 1, %v350_v15  ;;  %v466_v25 = vshll.u32 %v226_v18, 8 }
  0xe2   :  { %v124_v20 = vadd.s32 1, %v346_v16 }
  0xe3   :  { %vm229_vm2 = vcmp.gt.s32.totalorder %v228_v17, 0 }
  0xe4   :  { %v230_v21 = vsel %vm229_vm2, %v228_v17, 0  ;;  %vm125_vm3 = vcmp.gt.s32.totalorder %v124_v20, 0  ;;  %vm116_vm2 = vcmp.lt.s32.totalorder %v454_v7, 0 }
  0xe5   :  { %v231_v22 = vshrl.u32 %v230_v21, 5  ;;  %v232_v23 = vand.u32 31, %v230_v21  ;;  %v126_v24 = vsel %vm125_vm3, %v124_v20, 0  ;;  %v162_v20 = vshll.u32 %v122_v26, 8 }
  0xe6   :  { %v469_v30 = vshrl.u32 %v126_v24, 5  ;;  %v128_v31 = vand.u32 31, %v126_v24  ;;  %vm115_vm3 = vcmp.le.f32.partialorder %v114_v13, 0.7853982 }
  0xe7   :  { %v233_v27 = vsub.s32 32, %v232_v23  ;;  %v235_v29 = vshll.u32 %v411_v28, %v232_v23  ;;  %v238_v33 = vshll.u32 %v412_v32, %v232_v23  ;;  %v241_v35 = vshll.u32 %v413_v34, %v232_v23 }
  0xe8   :  { %v244_v37 = vshll.u32 %v414_v36, %v232_v23  ;;  %v247_v39 = vshll.u32 %v415_v38, %v232_v23  ;;  %vm250_vm4 = vcmp.lt.s32.totalorder %v231_v22, 1  ;;  %vm251_vm5 = vcmp.lt.s32.totalorder %v231_v22, 2 }
  0xe9   :  { %v236_v40 = vshrl.u32 %v412_v32, %v233_v27  ;;  %v239_v41 = vshrl.u32 %v413_v34, %v233_v27  ;;  %v242_v42 = vshrl.u32 %v414_v36, %v233_v27  ;;  %v234_v43 = vshrl.u32 %v411_v28, %v233_v27 }
  0xea   :  { %v245_v44 = vshrl.u32 %v415_v38, %v233_v27  ;;  %v248_v46 = vshrl.u32 %v416_v45, %v233_v27  ;;  %v129_v50 = vsub.s32 32, %v128_v31  ;;  %vm252_vm6 = vcmp.lt.s32.totalorder %v231_v22, 3 }
  0xeb   :  { %v237_v47 = vor.u32 %v236_v40, %v235_v29  ;;  %v240_v48 = vor.u32 %v239_v41, %v238_v33  ;;  %v243_v49 = vor.u32 %v242_v42, %v241_v35  ;;  %vm253_vm7 = vcmp.lt.s32.totalorder %v231_v22, 4 }
  0xec   :  { %v246_v51 = vor.u32 %v245_v44, %v244_v37  ;;  %v249_v52 = vor.u32 %v248_v46, %v247_v39  ;;  %v131_v60 = vshll.u32 %v411_v28, %v128_v31  ;;  %v132_v63 = vshrl.u32 %v412_v32, %v129_v50 }
  0xed   :  { %v254_v53 = vsel %vm250_vm4, %v234_v43, %v237_v47  ;;  %v255_v54 = vsel %vm253_vm7, %v243_v49, 2102212464  ;;  %v258_v55 = vsel %vm250_vm4, %v237_v47, %v240_v48  ;;  %v262_v56 = vsel %vm250_vm4, %v240_v48, %v243_v49 }
  0xee   :  { %v256_v57 = vsel %vm252_vm6, %v240_v48, %v255_v54  ;;  %v259_v58 = vsel %vm253_vm7, %v246_v51, 920167782  ;;  %v263_v59 = vsel %vm253_vm7, %v249_v52, 1326507024  ;;  %v134_v0 = vshll.u32 %v412_v32, %v128_v31 }
  0xef   :  { %v260_v61 = vsel %vm252_vm6, %v243_v49, %v259_v58  ;;  %v264_v62 = vsel %vm252_vm6, %v246_v51, %v263_v59  ;;  %v257_v1 = vsel %vm251_vm5, %v254_v53, %v256_v57  ;;  %v135_v4 = vshrl.u32 %v413_v34, %v129_v50 }
  0xf0   :  { %v261_v2 = vsel %vm251_vm5, %v258_v55, %v260_v61  ;;  %v265_v3 = vsel %vm251_vm5, %v262_v56, %v264_v62  ;;  %v133_v12 = vor.u32 %v132_v63, %v131_v60  ;;  %v137_v15 = vshll.u32 %v413_v34, %v128_v31 }
  0xf1   :  { %v478_v6 = vmul.u32.u64.low %v466_v25, %v265_v3  ;;  %v479_v9 = vmul.u32.u64.high %v466_v25, %v265_v3, %v478_v6  ;;  %v482_v10 = vmul.u32.u64.low %v466_v25, %v261_v2  ;;  %v483_v11 = vmul.u32.u64.high %v466_v25, %v261_v2, %v482_v10 }
  0xf2   :  { %v136_v14 = vor.u32 %v135_v4, %v134_v0  ;;  %v138_v16 = vshrl.u32 %v414_v36, %v129_v50  ;;  %v140_v17 = vshll.u32 %v414_v36, %v128_v31  ;;  %v141_v18 = vshrl.u32 %v415_v38, %v129_v50 }
  0xf3   :  { %v144_v19 = vshrl.u32 %v416_v45, %v129_v50  ;;  %v273_v21 = vmul.u32 %v466_v25, %v257_v1  ;;  %v130_v22 = vshrl.u32 %v411_v28, %v129_v50  ;;  %v143_v24 = vshll.u32 %v415_v38, %v128_v31 }
  0xf4   :  { %v139_v23 = vor.u32 %v138_v16, %v137_v15  ;;  %vm275_vm8 = vc.u32 %v479_v9, %v482_v10  ;;  %v276_v27 = vadd.s32 1, %v483_v11  ;;  %v142_v29 = vor.u32 %v141_v18, %v140_v17 }
  0xf5   :  { %vm146_vm9 = vcmp.lt.s32.totalorder %v469_v30, 1  ;;  %v145_v32 = vor.u32 %v144_v19, %v143_v24  ;;  %vm148_vm10 = vcmp.lt.s32.totalorder %v469_v30, 3  ;;  %vm149_vm11 = vcmp.lt.s32.totalorder %v469_v30, 4 }
  0xf6   :  { %v154_v33 = vsel %vm146_vm9, %v133_v12, %v136_v14  ;;  %v277_v26 = vsel %vm275_vm8, %v276_v27, %v483_v11  ;;  %v151_v34 = vsel %vm149_vm11, %v139_v23, 2102212464  ;;  %v155_v25 = vsel %vm149_vm11, %v142_v29, 920167782 }
  0xf7   :  { %v158_v28 = vsel %vm146_vm9, %v136_v14, %v139_v23  ;;  %v278_v35 = vadd.s32 %v277_v26, %v273_v21  ;;  %vm147_vm12 = vcmp.lt.s32.totalorder %v469_v30, 2  ;;  %v156_v31 = vsel %vm148_vm10, %v139_v23, %v155_v25 }
  0xf8   :  { %v159_v36 = vsel %vm149_vm11, %v145_v32, 1326507024  ;;  %v150_v37 = vsel %vm146_vm9, %v130_v22, %v133_v12  ;;  %v152_v38 = vsel %vm148_vm10, %v136_v14, %v151_v34  ;;  %v157_v39 = vsel %vm147_vm12, %v154_v33, %v156_v31 }
  0xf9   :  { %v160_v40 = vsel %vm148_vm10, %v142_v29, %v159_v36  ;;  %v279_v41 = vadd.s32 536870912, %v278_v35  ;;  %v493_v43 = vmul.u32.u64.low %v162_v20, %v157_v39  ;;  %v494_v44 = vmul.u32.u64.high %v162_v20, %v157_v39, %v493_v43 }
  0xfa   :  { %v161_v42 = vsel %vm147_vm12, %v158_v28, %v160_v40  ;;  %v153_v48 = vsel %vm147_vm12, %v150_v37, %v152_v38  ;;  %v274_v0 = vadd.s32 %v482_v10, %v479_v9  ;;  %vm310_vm8 = vweird.f32 %v452_v5 }
  0xfb   :  { %v496_v45 = vmul.u32.u64.low %v162_v20, %v161_v42  ;;  %v497_v46 = vmul.u32.u64.high %v162_v20, %v161_v42, %v496_v45  ;;  %v280_v47 = vshrl.u32 %v279_v41, 30  ;;  %v172_v50 = vadd.s32 1, %v494_v44 }
  0xfc   :  { %v169_v30 = vmul.u32 %v162_v20, %v153_v48  ;;  %v111_v42 = vlaneseq  ;;  %vm206_vm12 = vweird.f32 %v454_v7 }
  0xfd   :  { %v281_v49 = vshll.u32 %v280_v47, 30  ;;  %vm171_vm13 = vc.u32 %v497_v46, %v493_v43  ;;  %v170_v21 = vadd.s32 %v493_v43, %v497_v46  ;;  %v304_v10 = vsub.s32 4, %v280_v47 }
  0xfe   :  { %v173_v52 = vsel %vm171_vm13, %v172_v50, %v494_v44 }
  0xff   :  { %v282_v51 = vsub.s32 %v278_v35, %v281_v49  ;;  %v174_v53 = vadd.s32 %v173_v52, %v169_v30  ;;  %v305_v25 = vsel %vm220_vm0, %v304_v10, %v280_v47  ;;  %v112_v47 = vand.u32 127, %v111_v42 }
 0x100   :  { %v307_v37 = vsel %vm219_vm1, 0, %v305_v25 }
 0x101   :  { %v284_v54 = vsub.s32 0, %v282_v51  ;;  %v175_v55 = vadd.s32 536870912, %v174_v53  ;;  %v311_v40 = vadd.s32 3, %v307_v37  ;;  %vm113_vm6 = vcmp.eq.s32.totalorder %v112_v47, 0 }
 0x103   :  { %v351_v56 = vmin.u32 %v284_v54, %v282_v51  ;;  %v176_v57 = vshrl.u32 %v175_v55, 30  ;;  %v312_v45 = vand.u32 3, %v311_v40 }
 0x105   :  { %v286_v58 = vclz %v351_v56  ;;  %v177_v59 = vshll.u32 %v176_v57, 30  ;;  %v200_v39 = vsub.s32 4, %v176_v57  ;;  %vm317_vm4 = vcmp.eq.s32.totalorder %v312_v45, 2 }
 0x106   :  { %vm314_vm5 = vcmp.eq.s32.totalorder %v312_v45, 0  ;;  %vm313_vm7 = vcmp.lt.s32.totalorder %v312_v45, 2 }
 0x107   :  { %v352_v60 = vadd.s32 4294967294, %v286_v58  ;;  %v178_v61 = vsub.s32 %v174_v53, %v177_v59  ;;  %v201_v43 = vsel %vm116_vm2, %v200_v39, %v176_v57 }
 0x108   :  { %v203_v48 = vsel %vm115_vm3, 0, %v201_v43 }
 0x109   :  { %vm353_vm14 = vcmp.lt.s32.totalorder %v352_v60, 0  ;;  %v180_v63 = vsub.s32 0, %v178_v61 }
 0x10a   :  { %v289_v62 = vsel %vm353_vm14, 0, %v352_v60 }
 0x10b   :  { %v290_v1 = vsub.s32 32, %v289_v62  ;;  %v294_v2 = vsub.s32 4294967266, %v289_v62  ;;  %v347_v3 = vmin.u32 %v180_v63, %v178_v61  ;;  %v291_v4 = vshll.u32 %v282_v51, %v289_v62 }
 0x10c   :  { %v207_v51 = vadd.s32 3, %v203_v48 }
 0x10d   :  { %v292_v6 = vshrl.u32 %v274_v0, %v290_v1  ;;  %v295_v11 = vadd.s32 127, %v294_v2  ;;  %v182_v12 = vclz %v347_v3 }
 0x10e   :  { %v208_v55 = vand.u32 3, %v207_v51 }
 0x10f   :  { %v293_v14 = vor.u32 %v292_v6, %v291_v4  ;;  %v296_v15 = vshll.u32 %v295_v11, 23  ;;  %v348_v16 = vadd.s32 4294967294, %v182_v12 }
 0x110   :  { %vm213_vm9 = vcmp.eq.s32.totalorder %v208_v55, 2  ;;  %vm210_vm10 = vcmp.eq.s32.totalorder %v208_v55, 0  ;;  %vm209_vm11 = vcmp.lt.s32.totalorder %v208_v55, 2 }
 0x111   :  { %v297_v17 = vor.u32 4788187, %v296_v15  ;;  %vm349_vm15 = vcmp.lt.s32.totalorder %v348_v16, 0  ;;  %v300_v19 = vcvt.s32.f32 %v293_v14 }
 0x112   :  { %v185_v20 = vsel %vm349_vm15, 0, %v348_v16 }
 0x113   :  { %v298_v18 = vand.u32 2147483647, %v297_v17  ;;  %v186_v22 = vsub.s32 32, %v185_v20  ;;  %v190_v23 = vsub.s32 4294967266, %v185_v20  ;;  %v187_v24 = vshll.u32 %v178_v61, %v185_v20 }
 0x115   :  { %v301_v9 = vmul.f32 %v300_v19, %v298_v18  ;;  %v188_v27 = vshrl.u32 %v170_v21, %v186_v22  ;;  %v191_v29 = vadd.s32 127, %v190_v23 }
 0x117   :  { %v302_v32 = vxor.u32 2147483648, %v301_v9  ;;  %v189_v33 = vor.u32 %v188_v27, %v187_v24  ;;  %v192_v26 = vshll.u32 %v191_v29, 23 }
 0x119   :  { %v303_v34 = vsel %vm220_vm0, %v302_v32, %v301_v9  ;;  %v193_v35 = vor.u32 4788187, %v192_v26  ;;  %v196_v36 = vcvt.s32.f32 %v189_v33 }
 0x11a   :  { %v306_v28 = vsel %vm219_vm1, %v452_v5, %v303_v34 }
 0x11b   :  { %379 = vcosq.f32 %v306_v28  ;;  %v194_v31 = vand.u32 2147483647, %v193_v35 }
 0x11c   :  { %381 = vsinq.f32 %v306_v28 }
 0x11d   :  { %v197_v38 = vmul.f32 %v196_v36, %v194_v31 }
 0x11f   :  { %v198_v41 = vxor.u32 2147483648, %v197_v38 }
 0x121   :  { %v199_v8 = vsel %vm116_vm2, %v198_v41, %v197_v38 }
 0x122   :  { %v202_v44 = vsel %vm115_vm3, %v454_v7, %v199_v8 }
 0x123   :  { %383 = vcosq.f32 %v202_v44 }
 0x124   :  { %385 = vsinq.f32 %v202_v44 }
 0x125   :  { %v380_v46 = vpop.eup %379 }
 0x126   :  { %v382_v49 = vpop.eup %381  ;;  %v318_v50 = vxor.u32 2147483648, %v380_v46 }
 0x127   :  { %v315_v30 = vxor.u32 2147483648, %v382_v49 }
 0x128   :  { %v319_v52 = vsel %vm317_vm4, %v318_v50, %v382_v49 }
 0x129   :  { %v316_v13 = vsel %vm314_vm5, %v380_v46, %v315_v30 }
 0x12a   :  { %v320_v53 = vsel %vm313_vm7, %v316_v13, %v319_v52 }
 0x12b   :  { %v321_v54 = vsel %vm310_vm8, nan, %v320_v53 }
 0x12c   :  { %v323_v56 = vsel %vm113_vm6, %v452_v5, %v321_v54 }
 0x12d   :  { %325 = vst [vmem:[#allocation2 + $0x8] sm:$0xff] %v323_v56  ;;  %v384_v57 = vpop.eup %383 }
 0x12e   :  { %v386_v58 = vpop.eup %385  ;;  %v214_v59 = vxor.u32 2147483648, %v384_v57 }
 0x12f   :  { %v211_v60 = vxor.u32 2147483648, %v386_v58 }
 0x130   :  { %v215_v61 = vsel %vm213_vm9, %v214_v59, %v386_v58 }
 0x131   :  { %v212_v62 = vsel %vm210_vm10, %v384_v57, %v211_v60 }
 0x132   :  { %v216_v63 = vsel %vm209_vm11, %v212_v62, %v215_v61 }
 0x133   :  { %v217_v0 = vsel %vm206_vm12, nan, %v216_v63 }
 0x134   :  { %v322_v5 = vsel %vm113_vm6, %v454_v7, %v217_v0 }
 0x135   :  { %324 = vst [vmem:[#allocation2] sm:$0xff] %v322_v5 }
 0x136   :  { %398 = shalt.err (!%p395_p4)
}
 0x137   :  { %s399_s22 = scalar_lea.hbm %s533_s3, 256 }
 0x138   :  { %p400_p5 = scmp.ne.s32.totalorder %s533_s3, %s399_s22  ;;  %p403_p6 = scmp.lt.u32.totalorder %s399_s22, %s533_s3 }
 0x13a   :  { %p405_p7 = pnand %p403_p6, %p400_p5 }
 0x13c   :  { %408 = shalt.err (!%p405_p7)
}
 0x13d   :  { %s418_s27 = smov 128   ;;  %s419_s28 = smov 8  }
 0x13e   :  { %337 = dma.vmem_to_hbm [thread:$0]  %s332_s1, 256, %s533_s3, [#allocation3], %s418_s27, %s418_s27, %s419_s28  }
 0x13f   :  { %409 = dma.done.wait [#allocation3], 256  }
 0x140   :  { %410 = vsyncadd [#allocation3], 4294967040 }
 0x141   :  { %341 = vsyncpa [#allocation3], 1 }

</bundles_post_ra>
